<compile_context>
chip_gen: v7x
topology: tpu7x:2x2x1
jax: 0.10.0
libtpu: 0.0.40
codegen_flags: <defaults>
</compile_context>

<pallas_src>
import jax
import jax.numpy as jnp
from jax.experimental import pallas as pl
from jax.experimental.pallas import tpu as pltpu

_EPS = 1e-5
_LANE = 128
_DEFAULT_FEATURE_TILE = 512  # multiple of 128; per f32 buffer ~ N * 2 KiB


def _cbn_kernel(x_ref, gamma_ref, beta_ref, o_ref):
    # One (N, TC) feature tile resident in VMEM; reduce over the batch axis.
    x = x_ref[...].astype(jnp.float32)
    n = x.shape[0]
    inv_n = jnp.float32(1.0 / n)
    mean = jnp.sum(x, axis=0, keepdims=True) * inv_n                   # (1, TC)
    centered = x - mean
    var = jnp.sum(centered * centered, axis=0, keepdims=True) * inv_n  # biased
    scale = jax.lax.rsqrt(var + jnp.float32(_EPS)) * gamma_ref[...]    # (1, TC)
    o_ref[...] = (centered * scale + beta_ref[...]).astype(o_ref.dtype)


def _reference_bn1d(x, gamma, beta, eps=_EPS):
    """Pure-jnp reference; also the fallback path for tiny/lane-sparse shapes."""
    if x.shape[0] == 1:
        return x
    x32 = x.astype(jnp.float32)
    mean = jnp.mean(x32, axis=0, keepdims=True)
    var = jnp.mean((x32 - mean) ** 2, axis=0, keepdims=True)
    y = (x32 - mean) * jax.lax.rsqrt(var + eps) * gamma[None, :] + beta[None, :]
    return y.astype(x.dtype)


def conditional_batch_norm1d(x, gamma, beta, *, feature_tile=_DEFAULT_FEATURE_TILE):
    """x: (N, C).  gamma, beta: (C,) affine params.  Returns (N, C) in x.dtype."""
    N, C = x.shape
    if N == 1:
        # PyTorch: `if x.size(0) == 1: return x` (static shapes => Python if).
        return x

    # Lane-sparse / tiny problems (C < 128): masked partial stores + fixed
    # pallas_call overhead dwarf the few KB of work -> fused XLA path wins.
    if C < _LANE:
        return _reference_bn1d(x, gamma, beta)

    # Feature tile: a multiple of 128 lanes (lane-dense, software-pipelined),
    # or the full C when C is not 128-aligned (full-dim exemption).
    if C % _LANE == 0:
        tc = min(feature_tile, C)
    else:
        tc = C
    grid = (pl.cdiv(C, tc),)

    gamma2d = gamma.reshape(1, C).astype(jnp.float32)
    beta2d = beta.reshape(1, C).astype(jnp.float32)

    itemsize = jnp.dtype(x.dtype).itemsize
    cost = pl.CostEstimate(
        flops=5 * N * C,
        transcendentals=C,  # one rsqrt per feature
        bytes_accessed=2 * N * C * itemsize + 2 * C * 4,
    )

    # TODO(synk): for very large N (tens of thousands of rows) add an
    # "arbitrary" N grid axis accumulating per-feature sum / sum-of-squares in
    # f32 scratch, so a full (N, tc) tile never has to be VMEM-resident
    # (v7x has only 64 MiB physical VMEM).
    return pl.pallas_call(
        _cbn_kernel,
        out_shape=jax.ShapeDtypeStruct((N, C), x.dtype),
        grid=grid,
        in_specs=[
            pl.BlockSpec((N, tc), lambda j: (0, j)),
            pl.BlockSpec((1, tc), lambda j: (0, j)),
            pl.BlockSpec((1, tc), lambda j: (0, j)),
        ],
        out_specs=pl.BlockSpec((N, tc), lambda j: (0, j)),
        compiler_params=pltpu.CompilerParams(
            # Feature tiles are independent -> shard across both TCs on v7x;
            # free (no-op) on single-TC v5e/v6e.
            dimension_semantics=("parallel",),
            # Explicit, generation-safe scoped-VMEM budget (v5e default is
            # 16 MiB, v7x physical VMEM is 64 MiB); each buffer is ~N*tc*4 B.
            vmem_limit_bytes=32 * 1024 * 1024,
        ),
        cost_estimate=cost,
    )(x, gamma2d, beta2d)


if __name__ == "__main__":
    key = jax.random.PRNGKey(0)
    kx, kg, kb, k2 = jax.random.split(key, 4)

    # Main Pallas path: small but lane-dense, multi-tile (3 tiles of 512,
    # last one partial) to exercise pipelining and partial-block masking.
    N, C = 16, 1280
    x = jax.random.normal(kx, (N, C), dtype=jnp.float32)
    gamma = (jnp.ones((C,), jnp.float32)
             + 0.1 * jax.random.normal(kg, (C,), dtype=jnp.float32))
    beta = 0.1 * jax.random.normal(kb, (C,), dtype=jnp.float32)

    out = jax.block_until_ready(conditional_batch_norm1d(x, gamma, beta))
    ref = _reference_bn1d(x, gamma, beta)
    assert out.shape == (N, C) and out.dtype == x.dtype
    assert jnp.allclose(out, ref, atol=1e-4, rtol=1e-4), "mismatch at (16, 1280)"

    # N not a multiple of the 8-row sublane tile: padding must not pollute
    # the batch-axis mean/var (block covers full N -> no padded rows).
    x5 = jax.random.normal(k2, (5, 384), dtype=jnp.float32)
    g5 = jnp.ones((384,), jnp.float32)
    b5 = jnp.zeros((384,), jnp.float32)
    out5 = jax.block_until_ready(conditional_batch_norm1d(x5, g5, b5))
    assert jnp.allclose(out5, _reference_bn1d(x5, g5, b5),
                        atol=1e-4, rtol=1e-4), "mismatch at (5, 384)"

    # Batch-size-1 path: identity.
    x1 = jax.random.normal(key, (1, 256), dtype=jnp.float32)
    out1 = jax.block_until_ready(
        conditional_batch_norm1d(x1, jnp.ones((256,), jnp.float32),
                                 jnp.zeros((256,), jnp.float32)))
    assert jnp.array_equal(out1, x1)

    # Tiny / lane-sparse shape (C < 128): jnp fallback path.
    xt = jax.random.normal(key, (8, 32), dtype=jnp.float32)
    gt = jnp.ones((32,), jnp.float32)
    bt = jnp.zeros((32,), jnp.float32)
    outt = jax.block_until_ready(conditional_batch_norm1d(xt, gt, bt))
    assert jnp.allclose(outt, _reference_bn1d(xt, gt, bt), atol=1e-4, rtol=1e-4)

    print("KERNEL_OK")
</pallas_src>

<mosaic_0001>
module attributes {stable_mosaic.version = 11 : i64} {
  func.func @_cbn_kernel(%arg0: i32, %arg1: memref<16x512xf32, #tpu.memory_space<vmem>>, %arg2: memref<1x512xf32, #tpu.memory_space<vmem>>, %arg3: memref<1x512xf32, #tpu.memory_space<vmem>>, %arg4: memref<16x512xf32, #tpu.memory_space<vmem>>) attributes {dimension_semantics = [#tpu.dimension_semantics<parallel>], iteration_bounds = array<i64: 3>, scalar_prefetch = 0 : i64, scratch_operands = 0 : i64, tpu.core_type = #tpu.core_type<tc>, window_params = [{transform_indices = @transform_0, window_bounds = array<i64: 16, 512>}, {transform_indices = @transform_1, window_bounds = array<i64: 1, 512>}, {transform_indices = @transform_2, window_bounds = array<i64: 1, 512>}, {transform_indices = @transform_3, window_bounds = array<i64: 16, 512>}]} {
    %c0 = arith.constant 0 : index
    %c0_0 = arith.constant 0 : index
    %0 = vector.load %arg1[%c0, %c0_0] : memref<16x512xf32, #tpu.memory_space<vmem>>, vector<16x512xf32>
    %cst = arith.constant dense<0.000000e+00> : vector<512xf32>
    %1 = vector.multi_reduction <add>, %0, %cst [0] : vector<16x512xf32> to vector<512xf32>
    %2 = vector.shape_cast %1 : vector<512xf32> to vector<1x512xf32>
    %cst_1 = arith.constant 6.250000e-02 : f32
    %3 = vector.broadcast %cst_1 : f32 to vector<1x512xf32>
    %4 = arith.mulf %2, %3 : vector<1x512xf32>
    %5 = vector.broadcast %4 : vector<1x512xf32> to vector<16x512xf32>
    %6 = arith.subf %0, %5 : vector<16x512xf32>
    %7 = arith.mulf %6, %6 : vector<16x512xf32>
    %cst_2 = arith.constant dense<0.000000e+00> : vector<512xf32>
    %8 = vector.multi_reduction <add>, %7, %cst_2 [0] : vector<16x512xf32> to vector<512xf32>
    %9 = vector.shape_cast %8 : vector<512xf32> to vector<1x512xf32>
    %cst_3 = arith.constant 6.250000e-02 : f32
    %10 = vector.broadcast %cst_3 : f32 to vector<1x512xf32>
    %11 = arith.mulf %9, %10 : vector<1x512xf32>
    %cst_4 = arith.constant 9.99999974E-6 : f32
    %12 = vector.broadcast %cst_4 : f32 to vector<1x512xf32>
    %13 = arith.addf %11, %12 : vector<1x512xf32>
    %14 = math.rsqrt %13 : vector<1x512xf32>
    %c0_5 = arith.constant 0 : index
    %c0_6 = arith.constant 0 : index
    %15 = vector.load %arg2[%c0_5, %c0_6] : memref<1x512xf32, #tpu.memory_space<vmem>>, vector<1x512xf32>
    %16 = arith.mulf %14, %15 : vector<1x512xf32>
    %17 = vector.broadcast %16 : vector<1x512xf32> to vector<16x512xf32>
    %18 = arith.mulf %6, %17 : vector<16x512xf32>
    %c0_7 = arith.constant 0 : index
    %c0_8 = arith.constant 0 : index
    %19 = vector.load %arg3[%c0_7, %c0_8] : memref<1x512xf32, #tpu.memory_space<vmem>>, vector<1x512xf32>
    %20 = vector.broadcast %19 : vector<1x512xf32> to vector<16x512xf32>
    %21 = arith.addf %18, %20 : vector<16x512xf32>
    %c0_9 = arith.constant 0 : index
    %c0_10 = arith.constant 0 : index
    %22 = vector.load %arg4[%c0_9, %c0_10] : memref<16x512xf32, #tpu.memory_space<vmem>>, vector<16x512xf32>
    tpu.vector_store %arg4[%c0_9, %c0_10], %21 {strides = array<i32>} : memref<16x512xf32, #tpu.memory_space<vmem>>, vector<16x512xf32>,
    return
  }
  func.func @transform_0(%arg0: i32) -> (i32, i32) {
    %c0_i32 = arith.constant 0 : i32
    %c0_i32_0 = arith.constant 0 : i32
    return %c0_i32, %arg0 : i32, i32
  }
  func.func @transform_1(%arg0: i32) -> (i32, i32) {
    %c0_i32 = arith.constant 0 : i32
    %c0_i32_0 = arith.constant 0 : i32
    return %c0_i32, %arg0 : i32, i32
  }
  func.func @transform_2(%arg0: i32) -> (i32, i32) {
    %c0_i32 = arith.constant 0 : i32
    %c0_i32_0 = arith.constant 0 : i32
    return %c0_i32, %arg0 : i32, i32
  }
  func.func @transform_3(%arg0: i32) -> (i32, i32) {
    %c0_i32 = arith.constant 0 : i32
    %c0_i32_0 = arith.constant 0 : i32
    return %c0_i32, %arg0 : i32, i32
  }
}

</mosaic_0001>

<bundles_post_ra>
// kernel: tpu_custom_call.1
= control target key start
LH: loop header
LB: loop body
LE: loop exit
PB: predicated region body
PF: predicated region fallthrough
CT: control target
= control target key end

     0   :  { %8 = vsyncpa [#allocation3], 0  ;;  %s1221_s0 = inlined_call_operand.hbm [shape: f32[16,1280], index: 0, kind: input, shape index: {}]   ;;  %s1222_s1 = inlined_call_operand.hbm [shape: f32[1,1280], index: 1, kind: input, shape index: {}]   ;;  %s1223_s2 = inlined_call_operand.hbm [shape: f32[1,1280], index: 2, kind: input, shape index: {}]   ;;  %s1224_s3 = inlined_call_operand.hbm [shape: f32[16,1280], index: 3, kind: output, shape index: {}]  }
   0x1   :  { %10 = vsyncpa [#allocation3 + $0x1], 0 }
   0x2   :  { %11 = vsyncpa [#allocation6], 0 }
   0x3   :  { %13 = vsyncpa [#allocation6 + $0x1], 0 }
   0x4   :  { %14 = vsyncpa [#allocation4], 0 }
   0x5   :  { %16 = vsyncpa [#allocation4 + $0x1], 0  ;;  %s901_s12 = smov 0   ;;  %s903_s13 = smov 0  }
   0x6   :  { %s905_s14 = smov 0   ;;  %s907_s15 = smov 0  }
   0x7 LB: > { %s922_s16 = sadd.s32 4294967295, %s871_s15   ;;  %s620_s17 = sadd.s32 4294967294, %s871_s15   ;;  %s871_s15 = sphi %s907_s15, %s1238_s15   ;;  %s867_s14 = sphi %s905_s14, %s1237_s14   ;;  %s863_s13 = sphi %s903_s13, %s1236_s13   ;;  %s859_s12 = sphi %s901_s12, %s1235_s12  }
   0x8   : > { %s926_s18 = sadd.s32 1, %s871_s15   ;;  %s29_s19 = sadd.s32 1, %s867_s14 }
   0x9   : > { %s26_s20 = ssub.s32 %s871_s15, %s926_s18  ;;  %p36_p0 = scmp.ne.s32.totalorder %s867_s14, %s863_s13 }
   0xa   : > { %p27_p1 = scmp.eq.s32.totalorder %s26_s20, 0  ;;  %p37_p2 = scmp.eq.s32.totalorder %s871_s15, 0 }
   0xb   : > { %p42_p3 = scmp.ne.s32.totalorder %s863_s13, %s859_s12  ;;  %p43_p4 = scmp.eq.s32.totalorder %s922_s16, 0 }
   0xc   : > { %s938_s21 = scalar_select %p27_p1, %s867_s14, %s29_s19  }
   0xd   : > { %p940_p5 = por %p37_p2, %p36_p0  ;;  %p944_p6 = por %p43_p4, %p42_p3 }
   0xe   : > { %p118_p7 = scmp.eq.s32.totalorder %s922_s16, 2  ;;  %p124_p8 = scmp.eq.s32.totalorder %s620_s17, 2 }
   0xf   : > { %s1227_s22 = scalar_select %p940_p5, 1, 0 }
  0x10   : > { %s1228_s23 = scalar_select %p944_p6, 1, 0 }
  0x11   : > { %p949_p9 = por %p118_p7, %p36_p0  ;;  %p953_p10 = por %p124_p8, %p42_p3 }
  0x12   : > { %p622_p11 = scmp.ge.s32.totalorder %s871_s15, 3 }
  0x13   : > { %s1229_s24 = scalar_select %p949_p9, 1, 0 }
  0x14   : > { %s1230_s25 = scalar_select %p953_p10, 1, 0 }
  0x15   : > { %140 = sbr.rel (%p622_p11) target bundleno = 133 (0x85), region = 16 }
  0x1c   : > { %143 = sbr.rel (!%p940_p5) target bundleno = 63 (0x3f), region = 20  ;;  %s144_s26 = sand.u32 (%p940_p5), 1, %s867_s14  }
  0x1d   : > { %s624_s27 = sshll.u32 (%p940_p5), %s871_s15, 2  ;;  %s623_s28 = sshll.u32 (%p940_p5), %s144_s26, 6 }
  0x1e   : > { %s150_s29 = ssub.s32 (%p940_p5), 10, %s624_s27  ;;  %s968_s5 = scalar_lea.sflag (%p940_p5), [#allocation3], %s144_s26 }
  0x1f   : > { %p151_p12 = scmp.lt.s32.totalorder (%p940_p5), %s150_s29, 4  ;;  %s148_s6 = scalar_lea.vmem (%p940_p5), [#allocation2], %s623_s28 }
  0x23   : > { %s1240_s29 = smov (!%p151_p12, %s150_s29), 4 }
  0x24   : > { %s965_s30 = sshll.u32 %s1240_s29, 8 }
  0x25   : > { %s155_s4 = ssub.s32 1024, %s965_s30 }
  0x26   : > { %156 = vsyncadd %s968_s5, %s155_s4  ;;  %p626_p13 = scmp.ne.s32.totalorder %s965_s30, 0  ;;  %s656_s7 = sshll.u32 %s871_s15, 9 }
  0x27   : > { %s976_s10 = scalar_lea.hbm %s1221_s0, %s656_s7  ;;  %s628_s11 = sshll.u32 %s1240_s29, 3 }
  0x28   : > { %s162_s17 = sshll.u32 %s148_s6, 4  ;;  %s717_s19 = scalar_lea.hbm %s976_s10, %s965_s30  ;;  %s979_s17 = int_to_ptr.vmem [resolvable:$true] %s162_s17 }
  0x29   : > { %p718_p0 = scmp.ne.s32.totalorder %s976_s10, %s717_s19  ;;  %s721_s27 = scalar_lea.hbm %s1221_s0, 2560 }
  0x2a   : > { %p722_p3 = scmp.lt.u32.totalorder %s976_s10, %s1221_s0  ;;  %p723_p4 = scmp.lt.u32.totalorder %s721_s27, %s717_s19 }
  0x2b   : > { %p719_p1 = pnand %p718_p0, %p626_p13  ;;  %p725_p8 = scmp.lt.u32.totalorder %s717_s19, %s976_s10 }
  0x2c   : > { %p724_p7 = por %p723_p4, %p722_p3 }
  0x2d   : > { %p720_p2 = pneg %p719_p1 }
  0x2e   : > { %p726_p11 = por %p725_p8, %p724_p7 }
  0x30   : > { %p727_p12 = pnand %p726_p11, %p720_p2 }
  0x32   : > { %730 = shalt.err (!%p727_p12)
}
  0x33   : > { %s731_s6 = scalar_lea.vmem %s979_s17, %s965_s30  ;;  %s873_s7 = smov [#allocation2]  }
  0x34   : > { %p732_p0 = scmp.ne.s32.totalorder %s979_s17, %s731_s6  ;;  %s735_s8 = sshll.u32 %s873_s7, 4  ;;  %s736_s8 = int_to_ptr.vmem [resolvable:$false] %s735_s8 }
  0x35   : > { %s737_s9 = scalar_lea.vmem %s736_s8, 2048  ;;  %p738_p9 = scmp.lt.s32.totalorder %s979_s17, %s736_s8 }
  0x36   : > { %p733_p1 = pnand %p732_p0, %p626_p13  ;;  %p739_p3 = scmp.lt.s32.totalorder %s737_s9, %s731_s6 }
  0x38   : > { %p734_p10 = pneg %p733_p1  ;;  %p740_p4 = por %p739_p3, %p738_p9 }
  0x3a   : > { %p741_p7 = pnand %p740_p4, %p734_p10 }
  0x3c   : > { %744 = shalt.err (!%p741_p7)
}
  0x3d   : > { %s874_s19 = smov 1280   ;;  %s875_s20 = smov 512  }
  0x3e   : > { %168 = dma.hbm_to_vmem [thread:$0]  (%p626_p13), %s976_s10, %s965_s30, %s979_s17, %s968_s5, %s874_s19, %s875_s20, %s628_s11  }
  0x3f PF: > { %171 = sbr.rel (!%p940_p5) target bundleno = 97 (0x61), region = 24  ;;  %s172_s26 = sand.u32 (%p940_p5), 1, %s871_s15  }
  0x40   : > { %s174_s27 = sand.u32 (%p940_p5), 1, %s867_s14   ;;  %s632_s4 = sshll.u32 (%p940_p5), %s871_s15, 2 }
  0x41   : > { %s631_s28 = sshll.u32 (%p940_p5), %s174_s27, 2  ;;  %s178_s6 = ssub.s32 (%p940_p5), 10, %s632_s4 }
  0x42   : > { %p179_p9 = scmp.lt.s32.totalorder (%p940_p5), %s178_s6, 4  ;;  %s1016_s29 = scalar_lea.sflag (%p940_p5), [#allocation6], %s172_s26 }
  0x43   : > { %s176_s30 = scalar_lea.vmem (%p940_p5), [#allocation5], %s631_s28 }
  0x46   : > { %s1242_s6 = smov (!%p179_p9, %s178_s6), 4 }
  0x47   : > { %s1013_s7 = sshll.u32 %s1242_s6, 4 }
  0x48   : > { %s183_s8 = ssub.s32 64, %s1013_s7 }
  0x49   : > { %184 = vsyncadd %s1016_s29, %s183_s8  ;;  %p634_p10 = scmp.ne.s32.totalorder %s1013_s7, 0  ;;  %s659_s5 = sshll.u32 %s871_s15, 6 }
  0x4a   : > { %s1024_s17 = scalar_lea.hbm %s1222_s1, %s659_s5  ;;  %s189_s9 = sshll.u32 %s176_s30, 4  ;;  %s190_s9 = int_to_ptr.vmem [resolvable:$true] %s189_s9 }
  0x4b   : > { %s745_s19 = scalar_lea.hbm %s1024_s17, %s1013_s7  ;;  %s749_s27 = scalar_lea.hbm %s1222_s1, 160 }
  0x4c   : > { %p746_p13 = scmp.ne.s32.totalorder %s1024_s17, %s745_s19  ;;  %p750_p11 = scmp.lt.u32.totalorder %s1024_s17, %s1222_s1 }
  0x4d   : > { %p751_p12 = scmp.lt.u32.totalorder %s749_s27, %s745_s19  ;;  %p753_p1 = scmp.lt.u32.totalorder %s745_s19, %s1024_s17 }
  0x4e   : > { %p747_p2 = pnand %p746_p13, %p634_p10 }
  0x4f   : > { %p752_p0 = por %p751_p12, %p750_p11 }
  0x50   : > { %p748_p8 = pneg %p747_p2 }
  0x51   : > { %p754_p3 = por %p753_p1, %p752_p0 }
  0x53   : > { %p755_p4 = pnand %p754_p3, %p748_p8 }
  0x55   : > { %758 = shalt.err (!%p755_p4)
}
  0x56   : > { %s759_s6 = scalar_lea.vmem %s190_s9, %s1013_s7  ;;  %s876_s8 = smov [#allocation5]  }
  0x57   : > { %p760_p7 = scmp.ne.s32.totalorder %s190_s9, %s759_s6  ;;  %s763_s30 = sshll.u32 %s876_s8, 4  ;;  %s764_s30 = int_to_ptr.vmem [resolvable:$false] %s763_s30 }
  0x58   : > { %s765_s5 = scalar_lea.vmem %s764_s30, 128  ;;  %p766_p2 = scmp.lt.s32.totalorder %s190_s9, %s764_s30 }
  0x59   : > { %p761_p9 = pnand %p760_p7, %p634_p10  ;;  %p767_p6 = scmp.lt.s32.totalorder %s765_s5, %s759_s6 }
  0x5b   : > { %p762_p13 = pneg %p761_p9  ;;  %p768_p5 = por %p767_p6, %p766_p2 }
  0x5d   : > { %p769_p11 = pnand %p768_p5, %p762_p13 }
  0x5f   : > { %772 = shalt.err (!%p769_p11)
}
  0x60   : > { %192 = dma.hbm_to_vmem [thread:$0]  (%p634_p10), %s1024_s17, %s1013_s7, %s190_s9, %s1016_s29  }
  0x61 PF: > { %p1231_p8 = scmp.ne.s32.totalorder %s1227_s22, 0 }
  0x62   : > { %s196_s10 = sand.u32 (%p1231_p8), 1, %s871_s15   ;;  %s198_s11 = sand.u32 (%p1231_p8), 1, %s867_s14  }
  0x63   : > { %195 = sbr.rel (!%p1231_p8) target bundleno = 133 (0x85), region = 28  ;;  %s636_s19 = sshll.u32 (%p1231_p8), %s198_s11, 2 }
  0x64   : > { %s637_s20 = sshll.u32 (%p1231_p8), %s871_s15, 2  ;;  %s1055_s4 = scalar_lea.sflag (%p1231_p8), [#allocation6], %s196_s10 }
  0x65   : > { %s202_s26 = ssub.s32 (%p1231_p8), 10, %s637_s20  ;;  %s200_s7 = scalar_lea.vmem (%p1231_p8), [#allocation7], %s636_s19 }
  0x66   : > { %p203_p5 = scmp.lt.s32.totalorder (%p1231_p8), %s202_s26, 4 }
  0x6a   : > { %s1244_s26 = smov (!%p203_p5, %s202_s26), 4 }
  0x6b   : > { %s1052_s27 = sshll.u32 %s1244_s26, 4 }
  0x6c   : > { %s207_s28 = ssub.s32 64, %s1052_s27 }
  0x6d   : > { %208 = vsyncadd %s1055_s4, %s207_s28  ;;  %p639_p6 = scmp.ne.s32.totalorder %s1052_s27, 0  ;;  %s660_s22 = sshll.u32 %s871_s15, 6 }
  0x6e   : > { %s1063_s9 = scalar_lea.hbm %s1223_s2, %s660_s22  ;;  %s213_s6 = sshll.u32 %s200_s7, 4  ;;  %s214_s6 = int_to_ptr.vmem [resolvable:$true] %s213_s6 }
  0x6f   : > { %s773_s8 = scalar_lea.hbm %s1063_s9, %s1052_s27  ;;  %s777_s10 = scalar_lea.hbm %s1223_s2, 160 }
  0x70   : > { %p774_p10 = scmp.ne.s32.totalorder %s1063_s9, %s773_s8  ;;  %p778_p1 = scmp.lt.u32.totalorder %s1063_s9, %s1223_s2 }
  0x71   : > { %p779_p3 = scmp.lt.u32.totalorder %s777_s10, %s773_s8  ;;  %p781_p7 = scmp.lt.u32.totalorder %s773_s8, %s1063_s9 }
  0x72   : > { %p775_p12 = pnand %p774_p10, %p639_p6 }
  0x73   : > { %p780_p4 = por %p779_p3, %p778_p1 }
  0x74   : > { %p776_p0 = pneg %p775_p12 }
  0x75   : > { %p782_p9 = por %p781_p7, %p780_p4 }
  0x77   : > { %p783_p13 = pnand %p782_p9, %p776_p0 }
  0x79   : > { %786 = shalt.err (!%p783_p13)
}
  0x7a   : > { %s787_s20 = scalar_lea.vmem %s214_s6, %s1052_s27  ;;  %s877_s26 = smov [#allocation7]  }
  0x7b   : > { %p788_p2 = scmp.ne.s32.totalorder %s214_s6, %s787_s20  ;;  %s791_s28 = sshll.u32 %s877_s26, 4  ;;  %s792_s28 = int_to_ptr.vmem [resolvable:$false] %s791_s28 }
  0x7c   : > { %s793_s7 = scalar_lea.vmem %s792_s28, 128  ;;  %p794_p5 = scmp.lt.s32.totalorder %s214_s6, %s792_s28 }
  0x7d   : > { %p789_p11 = pnand %p788_p2, %p639_p6  ;;  %p795_p10 = scmp.lt.s32.totalorder %s793_s7, %s787_s20 }
  0x7f   : > { %p790_p8 = pneg %p789_p11  ;;  %p796_p12 = por %p795_p10, %p794_p5 }
  0x81   : > { %p797_p1 = pnand %p796_p12, %p790_p8 }
  0x83   : > { %800 = shalt.err (!%p797_p1)
}
  0x84   : > { %216 = dma.hbm_to_vmem [thread:$0]  (%p639_p6), %s1063_s9, %s1052_s27, %s214_s6, %s1055_s4  }
  0x85 PF: > { %p641_p0 = scmp.ge.s32.totalorder %s871_s15, 1  ;;  %p218_p3 = scmp.lt.s32.totalorder %s871_s15, 4 }
  0x87   : > { %p219_p4 = pnand %p641_p0, %p218_p3 }
  0x88   : > { %s1089_s22 = sand.u32 (!%p219_p4), 1, %s863_s13   ;;  %p1232_p6 = scmp.ne.s32.totalorder (!%p219_p4), %s1228_s23, 0 }
  0x89   : > { %222 = sbr.rel (%p219_p4) target bundleno = 240 (0xf0), region = 32  ;;  %s642_s29 = sshll.u32 (!%p219_p4), %s1089_s22, 6 }
  0x8a   : > { %s225_s17 = scalar_lea.sflag (!%p219_p4), [#allocation3], %s1089_s22  ;;  %s228_s8 = scalar_lea.vmem (!%p219_p4), [#allocation2], %s642_s29 }
  0x90   : > { %846 = dma.done.wait (%p1232_p6), %s225_s17, 1024  }
  0x91   : > { %848 = vsyncadd (%p1232_p6), %s225_s17, 4294966272  ;;  %s233_s27 = sand.u32 1, %s922_s16   ;;  %s643_s4 = sshll.u32 %s1089_s22, 2 }
  0x92   : > { %s234_s9 = scalar_lea.sflag [#allocation6], %s233_s27  ;;  %s1103_s6 = scalar_lea.vmem [#allocation5], %s643_s4 }
  0x93   : > { %850 = dma.done.wait (%p1232_p6), %s234_s9, 128  }
  0x94   : > { %852 = vsyncadd (%p1232_p6), %s234_s9, 4294967168  ;;  %v299_v0 = vld [vmem:[%s228_s8] sm:$0xff]  ;;  %v300_v3 = vld [vmem:[%s228_s8 + $0x8] sm:$0xff]  ;;  %s246_s23 = scalar_lea.vmem [#allocation7], %s643_s4  ;;  %s278_s30 = scalar_lea.vmem [#allocation8], %s642_s29 }
  0x95   : > { %v303_v1 = vld [vmem:[%s228_s8 + $0x20] sm:$0xff]  ;;  %v304_v4 = vld [vmem:[%s228_s8 + $0x28] sm:$0xff]  ;;  %v301_v6 = vld [vmem:[%s228_s8 + $0x10] sm:$0xff]  ;;  %s484_s5 = scalar_lea.sflag [#allocation4], %s1089_s22  ;;  %p1233_p7 = scmp.ne.s32.totalorder %s1229_s24, 0 }
  0x96   : > { %v307_v2 = vadd.f32 %v303_v1, %v299_v0  ;;  %v314_v5 = vadd.f32 %v304_v4, %v300_v3  ;;  %v305_v7 = vld [vmem:[%s228_s8 + $0x30] sm:$0xff]  ;;  %v302_v8 = vld [vmem:[%s228_s8 + $0x18] sm:$0xff]  ;;  %s647_s10 = sshll.u32 (%p1233_p7), %s922_s16, 2 }
  0x97   : > { %v321_v10 = vadd.f32 %v305_v7, %v301_v6  ;;  %v306_v11 = vld [vmem:[%s228_s8 + $0x38] sm:$0xff]  ;;  %s492_s11 = ssub.s32 (%p1233_p7), 10, %s647_s10 }
  0x98   : > { %v308_v9 = vrot.slane %v307_v2, 4  ;;  %v315_v12 = vrot.slane %v314_v5, 4  ;;  %v328_v13 = vadd.f32 %v306_v11, %v302_v8  ;;  %p493_p9 = scmp.lt.s32.totalorder (%p1233_p7), %s492_s11, 4 }
  0x99   : > { %v322_v15 = vrot.slane %v321_v10, 4 }
  0x9a   : > { %v309_v14 = vadd.f32 %v308_v9, %v307_v2  ;;  %v316_v16 = vadd.f32 %v315_v12, %v314_v5  ;;  %v329_v17 = vrot.slane %v328_v13, 4 }
  0x9b   : > { %v323_v19 = vadd.f32 %v322_v15, %v321_v10 }
  0x9c   : > { %v310_v18 = vrot.slane %v309_v14, 2  ;;  %v317_v20 = vrot.slane %v316_v16, 2  ;;  %v330_v21 = vadd.f32 %v329_v17, %v328_v13 }
  0x9d   : > { %v324_v23 = vrot.slane %v323_v19, 2 }
  0x9e   : > { %v311_v22 = vadd.f32 %v310_v18, %v309_v14  ;;  %v318_v24 = vadd.f32 %v317_v20, %v316_v16  ;;  %v331_v25 = vrot.slane %v330_v21, 2  ;;  %v397_v16 = vlaneseq }
  0x9f   : > { %v325_v27 = vadd.f32 %v324_v23, %v323_v19 }
  0xa0   : > { %v312_v26 = vrot.slane %v311_v22, 1  ;;  %v319_v28 = vrot.slane %v318_v24, 1  ;;  %v332_v29 = vadd.f32 %v331_v25, %v330_v21  ;;  %v398_v25 = vshrl.u32 %v397_v16, 7 }
  0xa1   : > { %v326_v31 = vrot.slane %v325_v27, 1 }
  0xa2   : > { %v313_v30 = vadd.f32 %v312_v26, %v311_v22  ;;  %v320_v32 = vadd.f32 %v319_v28, %v318_v24  ;;  %v333_v33 = vrot.slane %v332_v29, 1 }
  0xa3   : > { %v327_v35 = vadd.f32 %v326_v31, %v325_v27  ;;  %v395_v31 = vld [vmem:[%s1103_s6] sm:$0xf] }
  0xa4   : > { %v335_v34 = vmul.f32 0.0625, %v313_v30  ;;  %v336_v36 = vmul.f32 0.0625, %v320_v32  ;;  %v334_v37 = vadd.f32 %v333_v33, %v332_v29  ;;  %v399_v30 = vsub.s32 0, %v398_v25 }
  0xa5   : > { %v337_v40 = vmul.f32 0.0625, %v327_v35  ;;  %v403_v32 = vsub.s32 1, %v398_v25  ;;  %v407_v33 = vsub.s32 2, %v398_v25 }
  0xa6   : > { %v1109_v38 = vsub.f32 %v299_v0, %v335_v34  ;;  %v1111_v39 = vsub.f32 %v303_v1, %v335_v34  ;;  %v1113_v41 = vsub.f32 %v300_v3, %v336_v36  ;;  %v1115_v42 = vsub.f32 %v304_v4, %v336_v36 }
  0xa7   : > { %v338_v43 = vmul.f32 0.0625, %v334_v37  ;;  %v1121_v46 = vsub.f32 %v301_v6, %v337_v40  ;;  %v1123_v47 = vsub.f32 %v305_v7, %v337_v40  ;;  %v411_v34 = vsub.s32 3, %v398_v25 }
  0xa8   : > { %v347_v44 = vmul.f32 %v1109_v38, %v1109_v38  ;;  %v351_v45 = vmul.f32 %v1111_v39, %v1111_v39  ;;  %v348_v48 = vmul.f32 %v1113_v41, %v1113_v41  ;;  %v352_v49 = vmul.f32 %v1115_v42, %v1115_v42 }
  0xa9   : > { %v1129_v50 = vsub.f32 %v302_v8, %v338_v43  ;;  %v1131_v51 = vsub.f32 %v306_v11, %v338_v43  ;;  %v349_v53 = vmul.f32 %v1121_v46, %v1121_v46  ;;  %v353_v54 = vmul.f32 %v1123_v47, %v1123_v47  ;;  %v445_v43 = vld [vmem:[%s246_s23] sm:$0xf] }
  0xaa   : > { %v355_v52 = vadd.f32 %v351_v45, %v347_v44  ;;  %v362_v55 = vadd.f32 %v352_v49, %v348_v48  ;;  %v400_v35 = vrot.slane %v395_v31, %v399_v30  ;;  %v404_v36 = vrot.slane %v395_v31, %v403_v32 }
  0xab   : > { %v350_v56 = vmul.f32 %v1129_v50, %v1129_v50  ;;  %v354_v57 = vmul.f32 %v1131_v51, %v1131_v51  ;;  %v369_v59 = vadd.f32 %v353_v54, %v349_v53  ;;  %v408_v37 = vrot.slane %v395_v31, %v407_v33 }
  0xac   : > { %v356_v58 = vrot.slane %v355_v52, 4  ;;  %v363_v60 = vrot.slane %v362_v55, 4  ;;  %v412_v44 = vrot.slane %v395_v31, %v411_v34 }
  0xad   : > { %v376_v61 = vadd.f32 %v354_v57, %v350_v56  ;;  %v370_v63 = vrot.slane %v369_v59, 4 }
  0xae   : > { %v357_v62 = vadd.f32 %v356_v58, %v355_v52  ;;  %v364_v0 = vadd.f32 %v363_v60, %v362_v55  ;;  %v450_v55 = vrot.slane %v445_v43, %v399_v30  ;;  %v454_v58 = vrot.slane %v445_v43, %v403_v32 }
  0xaf   : > { %v377_v1 = vrot.slane %v376_v61, 4  ;;  %v371_v3 = vadd.f32 %v370_v63, %v369_v59 }
  0xb0   : > { %v358_v2 = vrot.slane %v357_v62, 2  ;;  %v365_v4 = vrot.slane %v364_v0, 2 }
  0xb1   : > { %v378_v5 = vadd.f32 %v377_v1, %v376_v61  ;;  %v372_v7 = vrot.slane %v371_v3, 2 }
  0xb2   : > { %v359_v6 = vadd.f32 %v358_v2, %v357_v62  ;;  %v366_v8 = vadd.f32 %v365_v4, %v364_v0  ;;  %v458_v62 = vrot.slane %v445_v43, %v407_v33  ;;  %v462_v2 = vrot.slane %v445_v43, %v411_v34 }
  0xb3   : > { %v379_v9 = vrot.slane %v378_v5, 2  ;;  %v373_v11 = vadd.f32 %v372_v7, %v371_v3 }
  0xb4   : > { %v360_v10 = vrot.slane %v359_v6, 1  ;;  %v367_v12 = vrot.slane %v366_v8, 1 }
  0xb5   : > { %v380_v13 = vadd.f32 %v379_v9, %v378_v5  ;;  %v374_v15 = vrot.slane %v373_v11, 1 }
  0xb6   : > { %v361_v14 = vadd.f32 %v360_v10, %v359_v6  ;;  %v368_v17 = vadd.f32 %v367_v12, %v366_v8 }
  0xb7   : > { %v381_v18 = vrot.slane %v380_v13, 1  ;;  %v375_v20 = vadd.f32 %v374_v15, %v373_v11 }
  0xb8   : > { %v383_v19 = vmul.f32 0.0625, %v361_v14  ;;  %v384_v21 = vmul.f32 0.0625, %v368_v17 }
  0xb9   : > { %v382_v22 = vadd.f32 %v381_v18, %v380_v13  ;;  %v385_v24 = vmul.f32 0.0625, %v375_v20 }
  0xba   : > { %v387_v23 = vadd.f32 1e-05, %v383_v19  ;;  %v388_v26 = vadd.f32 1e-05, %v384_v21 }
  0xbb   : > { %v386_v27 = vmul.f32 0.0625, %v382_v22  ;;  %v389_v28 = vadd.f32 1e-05, %v385_v24 }
  0xbc   : > { %709 = vrsqrt.f32 %v387_v23 }
  0xbd   : > { %711 = vrsqrt.f32 %v388_v26  ;;  %v390_v29 = vadd.f32 1e-05, %v386_v27 }
  0xbe   : > { %713 = vrsqrt.f32 %v389_v28 }
  0xbf   : > { %715 = vrsqrt.f32 %v390_v29 }
  0xc6   : > { %v710_v40 = vpop.eup %709 }
  0xc7   : > { %v712_v45 = vpop.eup %711  ;;  %v417_v48 = vmul.f32 %v710_v40, %v400_v35 }
  0xc8   : > { %v714_v49 = vpop.eup %713  ;;  %v418_v52 = vmul.f32 %v712_v45, %v404_v36 }
  0xc9   : > { %v716_v53 = vpop.eup %715  ;;  %v424_v54 = vrot.slane %v417_v48, %v399_v30  ;;  %v419_v56 = vmul.f32 %v714_v49, %v408_v37 }
  0xca   : > { %v428_v57 = vrot.slane %v418_v52, %v399_v30  ;;  %v420_v59 = vmul.f32 %v716_v53, %v412_v44 }
  0xcb   : > { %v437_v60 = vmul.f32 %v424_v54, %v1109_v38  ;;  %v432_v61 = vrot.slane %v419_v56, %v399_v30  ;;  %v441_v63 = vmul.f32 %v424_v54, %v1111_v39 }
  0xcc   : > { %v438_v0 = vmul.f32 %v428_v57, %v1113_v41  ;;  %v436_v1 = vrot.slane %v420_v59, %v399_v30  ;;  %v442_v3 = vmul.f32 %v428_v57, %v1115_v42  ;;  %490 = sbr.rel (!%p1233_p7) target bundleno = 240 (0xf0), region = 48 }
  0xcd   : > { %v467_v4 = vadd.f32 %v450_v55, %v437_v60  ;;  %v439_v5 = vmul.f32 %v432_v61, %v1121_v46  ;;  %v471_v6 = vadd.f32 %v450_v55, %v441_v63  ;;  %v443_v7 = vmul.f32 %v432_v61, %v1123_v47 }
  0xce   : > { %v468_v8 = vadd.f32 %v454_v58, %v438_v0  ;;  %v440_v38 = vmul.f32 %v436_v1, %v1129_v50  ;;  %v472_v9 = vadd.f32 %v454_v58, %v442_v3  ;;  %v444_v10 = vmul.f32 %v436_v1, %v1131_v51 }
  0xcf   : > { %475 = vst [vmem:[%s278_s30] sm:$0xff] %v467_v4  ;;  %v469_v39 = vadd.f32 %v458_v62, %v439_v5  ;;  %479 = vst [vmem:[%s278_s30 + $0x20] sm:$0xff] %v471_v6  ;;  %v473_v41 = vadd.f32 %v458_v62, %v443_v7 }
  0xd0   : > { %476 = vst [vmem:[%s278_s30 + $0x8] sm:$0xff] %v468_v8  ;;  %v470_v42 = vadd.f32 %v462_v2, %v440_v38  ;;  %480 = vst [vmem:[%s278_s30 + $0x28] sm:$0xff] %v472_v9  ;;  %v474_v46 = vadd.f32 %v462_v2, %v444_v10 }
  0xd1   : > { %477 = vst [vmem:[%s278_s30 + $0x10] sm:$0xff] %v469_v39  ;;  %481 = vst [vmem:[%s278_s30 + $0x30] sm:$0xff] %v473_v41 }
  0xd2   : > { %478 = vst [vmem:[%s278_s30 + $0x18] sm:$0xff] %v470_v42  ;;  %482 = vst [vmem:[%s278_s30 + $0x38] sm:$0xff] %v474_v46 }
  0xd3   : > { %s1246_s11 = smov (!%p493_p9, %s492_s11), 4 }
  0xd4   : > { %s1161_s19 = sshll.u32 %s1246_s11, 8 }
  0xd5   : > { %s497_s20 = ssub.s32 1024, %s1161_s19 }
  0xd6   : > { %498 = vsyncadd %s484_s5, %s497_s20  ;;  %p649_p13 = scmp.ne.s32.totalorder %s1161_s19, 0  ;;  %s661_s24 = sshll.u32 %s922_s16, 9 }
  0xd7   : > { %s1171_s7 = scalar_lea.hbm %s1224_s3, %s661_s24  ;;  %s651_s29 = sshll.u32 %s1246_s11, 3 }
  0xd8   : > { %s504_s17 = sshll.u32 %s278_s30, 4  ;;  %s878_s27 = smov [#allocation8]   ;;  %s1174_s17 = int_to_ptr.vmem [resolvable:$true] %s504_s17 }
  0xd9   : > { %s801_s8 = scalar_lea.vmem %s1174_s17, %s1161_s19  ;;  %s805_s4 = sshll.u32 %s878_s27, 4  ;;  %s806_s4 = int_to_ptr.vmem [resolvable:$false] %s805_s4 }
  0xda   : > { %p802_p2 = scmp.ne.s32.totalorder %s1174_s17, %s801_s8  ;;  %s807_s16 = scalar_lea.vmem %s806_s4, 2048 }
  0xdb   : > { %p808_p5 = scmp.lt.s32.totalorder %s1174_s17, %s806_s4  ;;  %p809_p10 = scmp.lt.s32.totalorder %s807_s16, %s801_s8 }
  0xdc   : > { %p803_p11 = pnand %p802_p2, %p649_p13 }
  0xdd   : > { %p810_p12 = por %p809_p10, %p808_p5 }
  0xde   : > { %p804_p8 = pneg %p803_p11 }
  0xe0   : > { %p811_p1 = pnand %p810_p12, %p804_p8 }
  0xe2   : > { %814 = shalt.err (!%p811_p1)
}
  0xe3   : > { %s815_s9 = scalar_lea.hbm %s1171_s7, %s1161_s19  ;;  %s819_s30 = scalar_lea.hbm %s1224_s3, 2560 }
  0xe4   : > { %p816_p0 = scmp.ne.s32.totalorder %s1171_s7, %s815_s9  ;;  %p820_p6 = scmp.lt.u32.totalorder %s1171_s7, %s1224_s3 }
  0xe5   : > { %p821_p7 = scmp.lt.u32.totalorder %s819_s30, %s815_s9  ;;  %p823_p2 = scmp.lt.u32.totalorder %s815_s9, %s1171_s7 }
  0xe6   : > { %p817_p3 = pnand %p816_p0, %p649_p13 }
  0xe7   : > { %p822_p9 = por %p821_p7, %p820_p6 }
  0xe8   : > { %p818_p4 = pneg %p817_p3 }
  0xe9   : > { %p824_p11 = por %p823_p2, %p822_p9 }
  0xeb   : > { %p825_p8 = pnand %p824_p11, %p818_p4 }
  0xed   : > { %828 = shalt.err (!%p825_p8)
}
  0xee   : > { %s879_s24 = smov 512   ;;  %s880_s26 = smov 1280  }
  0xef   : > { %510 = dma.vmem_to_hbm [thread:$0]  (%p649_p13), %s1174_s17, %s1161_s19, %s1171_s7, %s484_s5, %s879_s24, %s880_s26, %s651_s29  }
  0xf0 PF: > { %p672_p5 = scmp.ge.s32.totalorder %s871_s15, 2  ;;  %s519_s28 = sand.u32 1, %s859_s12  }
  0xf1   : > { %p1234_p10 = scmp.ne.s32.totalorder %s1230_s25, 0  ;;  %s520_s8 = scalar_lea.sflag [#allocation4], %s519_s28 }
  0xf3   : > { %p669_p12 = pnand %p672_p5, %p1234_p10 }
  0xf5   : > { %854 = dma.done.wait (!%p669_p12), %s520_s8, 1024  }
  0xf6   : > { %856 = vsyncadd (!%p669_p12), %s520_s8, 4294966272  ;;  %p19_p1 = scmp.ge.s32.totalorder %s926_s18, 5   ;;  %s1235_s12 = smov %s863_s13 }
  0xf7   : > { %s1236_s13 = smov %s867_s14  ;;  %s1237_s14 = smov %s938_s21 }
  0xf8   : > { %s1238_s15 = smov %s926_s18  ;;  %21 = sbr.rel (!%p19_p1) target bundleno = 7 (0x7), region = 101 }
  0xff   :  { %525 = vsyncpa [#allocation3], 1 }
 0x100   :  { %527 = vsyncpa [#allocation3 + $0x1], 1 }
 0x101   :  { %528 = vsyncpa [#allocation6], 1 }
 0x102   :  { %530 = vsyncpa [#allocation6 + $0x1], 1 }
 0x103   :  { %531 = vsyncpa [#allocation4], 1 }
 0x104   :  { %533 = vsyncpa [#allocation4 + $0x1], 1 }

</bundles_post_ra>
